<compile_context>
chip_gen: v6e
topology: v6e:2x2x1
jax: 0.10.0
libtpu: 0.0.40
codegen_flags: <defaults>
</compile_context>

<pallas_src>
import jax
import jax.numpy as jnp
import numpy as np
from jax import lax
from jax.experimental import pallas as pl
from jax.experimental.pallas import tpu as pltpu


def _affine_kernel(x_ref, scale_ref, shift_ref, o_ref):
    # fp32 FMA regardless of x dtype; params are fp32 blocks that broadcast
    # across the data block. Cast back to the output dtype on the store.
    x = x_ref[...].astype(jnp.float32)
    o_ref[...] = (x * scale_ref[...] + shift_ref[...]).astype(o_ref.dtype)


_TARGET_BLOCK_BYTES = 4 * 1024 * 1024    # per-block target (x / out each)
_MIN_BLOCK_BYTES = 64 * 1024             # never bother going below this
_VMEM_LIMIT_BYTES = 32 * 1024 * 1024     # 4 double-buffered blocks + params << 32 MiB


def _sublane_align(itemsize):
    # Sublane packing alignment per dtype width.
    return {4: 8, 2: 16, 1: 32}.get(itemsize, 8)


def _block_budget(total_bytes):
    # Cap block size so the grid keeps >= ~8 steps (2 TCs x >=4 on v7x),
    # but never shrink below a useful minimum tile.
    return max(_MIN_BLOCK_BYTES, min(_TARGET_BLOCK_BYTES, total_bytes // 8))


def _nd_tiles(N, C, S, itemsize):
    """Block shape (tn, tc, ts) for x viewed as (N, C, S)."""
    budget = _block_budget(N * C * S * itemsize)
    align = _sublane_align(itemsize)
    row_bytes = S * itemsize
    min_tc = C if C <= align else align          # full-extent if C < alignment
    if min_tc * row_bytes <= budget:
        # Contiguous full-S blocks (single contiguous HBM slab per DMA).
        ts = S
        tc_budget = budget // row_bytes
        if tc_budget >= C:
            tc = C
            tn = max(1, min(N, budget // (C * row_bytes)))   # span batches
        else:
            tc = min(C, max(align, (tc_budget // align) * align))
            tn = 1
    else:
        # A minimum row-set at full S exceeds the budget: tile S on 128 lanes.
        tc = min_tc
        lane_budget = max(128, budget // (tc * itemsize))
        ts = max(128, (lane_budget // 128) * 128)
        tn = 1
    return tn, tc, ts


def _2d_tiles(N, C, itemsize):
    """Block shape (tn, tl) for x of shape (N, C) with channels on lanes."""
    budget = _block_budget(N * C * itemsize)
    align = _sublane_align(itemsize)
    row_bytes = C * itemsize
    min_tn = N if N <= align else align
    if min_tn * row_bytes <= budget:
        tl = C
        tn_budget = budget // row_bytes
        tn = N if tn_budget >= N else min(N, max(align, (tn_budget // align) * align))
    else:
        tn = min_tn
        lane_budget = max(128, budget // (tn * itemsize))
        tl = max(128, (lane_budget // 128) * 128)
    return tn, tl


def frozen_batch_norm(x, weight, bias, running_mean, running_var, eps=0.0):
    """y = x * scale + shift with per-channel (axis-1) frozen scale/shift.

    scale = weight * rsqrt(running_var + eps); shift = bias - running_mean * scale.
    The reference module uses no eps, so eps defaults to 0.0. Params are kept
    in fp32 and the affine is computed in fp32 inside the kernel.
    """
    if x.ndim < 2:
        raise ValueError("FrozenBatchNorm expects input of rank >= 2: (N, C, ...)")

    f32 = jnp.float32
    scale = weight.astype(f32) * lax.rsqrt(running_var.astype(f32) + eps)
    shift = bias.astype(f32) - running_mean.astype(f32) * scale

    N, C = int(x.shape[0]), int(x.shape[1])
    itemsize = jnp.dtype(x.dtype).itemsize
    numel = int(np.prod(x.shape))
    cost = pl.CostEstimate(flops=2 * numel, transcendentals=0,
                           bytes_accessed=2 * numel * itemsize + 2 * C * 4)

    if x.ndim == 2:
        # (N, C): channels on the lane axis; params broadcast over rows.
        tn, tl = _2d_tiles(N, C, itemsize)
        grid = (pl.cdiv(N, tn), pl.cdiv(C, tl))
        return pl.pallas_call(
            _affine_kernel,
            out_shape=jax.ShapeDtypeStruct((N, C), x.dtype),
            grid=grid,
            in_specs=[
                pl.BlockSpec((tn, tl), lambda i, j: (i, j)),
                pl.BlockSpec((1, tl), lambda i, j: (0, j)),
                pl.BlockSpec((1, tl), lambda i, j: (0, j)),
            ],
            out_specs=pl.BlockSpec((tn, tl), lambda i, j: (i, j)),
            compiler_params=pltpu.CompilerParams(
                dimension_semantics=("parallel", "parallel"),
                vmem_limit_bytes=_VMEM_LIMIT_BYTES),
            cost_estimate=cost,
        )(x, scale.reshape(1, C), shift.reshape(1, C))

    # General ND case: view as (N, C, S), S = prod(spatial) (free reshape).
    S = int(np.prod(x.shape[2:]))
    x3 = x.reshape(N, C, S)
    tn, tc, ts = _nd_tiles(N, C, S, itemsize)
    grid = (pl.cdiv(N, tn), pl.cdiv(C, tc), pl.cdiv(S, ts))

    out3 = pl.pallas_call(
        _affine_kernel,
        out_shape=jax.ShapeDtypeStruct((N, C, S), x.dtype),
        grid=grid,
        in_specs=[
            pl.BlockSpec((tn, tc, ts), lambda n, c, s: (n, c, s)),
            pl.BlockSpec((1, tc, 1), lambda n, c, s: (0, c, 0)),
            pl.BlockSpec((1, tc, 1), lambda n, c, s: (0, c, 0)),
        ],
        out_specs=pl.BlockSpec((tn, tc, ts), lambda n, c, s: (n, c, s)),
        compiler_params=pltpu.CompilerParams(
            dimension_semantics=("parallel", "parallel", "parallel"),
            vmem_limit_bytes=_VMEM_LIMIT_BYTES),
        cost_estimate=cost,
    )(x3, scale.reshape(1, C, 1), shift.reshape(1, C, 1))
    return out3.reshape(x.shape)


if __name__ == "__main__":
    key = jax.random.PRNGKey(0)
    kx, kw, kb, km, kv = jax.random.split(key, 5)

    # --- Main check: small NCHW fp32 input, mirrors the PyTorch forward. ---
    N, C, H, W = 2, 4, 16, 16
    x = jax.random.normal(kx, (N, C, H, W), dtype=jnp.float32)
    weight = 1.0 + 0.1 * jax.random.normal(kw, (C,), dtype=jnp.float32)
    bias = 0.1 * jax.random.normal(kb, (C,), dtype=jnp.float32)
    running_mean = 0.1 * jax.random.normal(km, (C,), dtype=jnp.float32)
    running_var = 1.0 + 0.05 * jnp.abs(jax.random.normal(kv, (C,), dtype=jnp.float32))

    y = jax.block_until_ready(frozen_batch_norm(x, weight, bias, running_mean, running_var))
    scale_ref = weight * lax.rsqrt(running_var)
    shift_ref = bias - running_mean * scale_ref
    y_ref = x * scale_ref.reshape(1, C, 1, 1) + shift_ref.reshape(1, C, 1, 1)
    np.testing.assert_allclose(np.asarray(y), np.asarray(y_ref), rtol=1e-6, atol=1e-6)

    # --- Odd, non-aligned dims exercise the ragged/full-extent block handling. ---
    xo = jax.random.normal(kx, (2, 3, 5, 7), dtype=jnp.float32)
    wo = 1.0 + 0.1 * jax.random.normal(kw, (3,), dtype=jnp.float32)
    bo = 0.1 * jax.random.normal(kb, (3,), dtype=jnp.float32)
    mo = 0.1 * jax.random.normal(km, (3,), dtype=jnp.float32)
    vo = 1.0 + 0.05 * jnp.abs(jax.random.normal(kv, (3,), dtype=jnp.float32))
    yo = jax.block_until_ready(frozen_batch_norm(xo, wo, bo, mo, vo))
    so = wo * lax.rsqrt(vo)
    yo_ref = xo * so.reshape(1, 3, 1, 1) + (bo - mo * so).reshape(1, 3, 1, 1)
    np.testing.assert_allclose(np.asarray(yo), np.asarray(yo_ref), rtol=1e-6, atol=1e-6)

    # --- bf16 data path with fp32 in-kernel FMA. ---
    Cb = 8
    xb = jax.random.normal(kx, (2, Cb, 8, 8), dtype=jnp.float32).astype(jnp.bfloat16)
    wb = 1.0 + 0.1 * jax.random.normal(kw, (Cb,), dtype=jnp.float32)
    bb = 0.1 * jax.random.normal(kb, (Cb,), dtype=jnp.float32)
    mb = 0.1 * jax.random.normal(km, (Cb,), dtype=jnp.float32)
    vb = 1.0 + 0.05 * jnp.abs(jax.random.normal(kv, (Cb,), dtype=jnp.float32))
    yb = jax.block_until_ready(frozen_batch_norm(xb, wb, bb, mb, vb))
    sb = wb * lax.rsqrt(vb)
    hb = bb - mb * sb
    yb_ref = (xb.astype(jnp.float32) * sb.reshape(1, Cb, 1, 1)
              + hb.reshape(1, Cb, 1, 1)).astype(jnp.bfloat16)
    np.testing.assert_allclose(np.asarray(yb.astype(jnp.float32)),
                               np.asarray(yb_ref.astype(jnp.float32)),
                               rtol=1e-2, atol=1e-2)

    # --- 2-D (no spatial dims) path: channels on the lane axis. ---
    N2, C2 = 16, 128
    x2 = jax.random.normal(kx, (N2, C2), dtype=jnp.float32)
    w2 = 1.0 + 0.1 * jax.random.normal(kw, (C2,), dtype=jnp.float32)
    b2 = 0.1 * jax.random.normal(kb, (C2,), dtype=jnp.float32)
    m2 = 0.1 * jax.random.normal(km, (C2,), dtype=jnp.float32)
    v2 = 1.0 + 0.05 * jnp.abs(jax.random.normal(kv, (C2,), dtype=jnp.float32))
    y2 = jax.block_until_ready(frozen_batch_norm(x2, w2, b2, m2, v2))
    s2 = w2 * lax.rsqrt(v2)
    y2_ref = x2 * s2.reshape(1, C2) + (b2 - m2 * s2).reshape(1, C2)
    np.testing.assert_allclose(np.asarray(y2), np.asarray(y2_ref), rtol=1e-6, atol=1e-6)

    print("KERNEL_OK")
</pallas_src>

<mosaic_0001>
module attributes {stable_mosaic.version = 11 : i64} {
  func.func @_affine_kernel(%arg0: i32, %arg1: i32, %arg2: i32, %arg3: memref<2x4x256xf32, #tpu.memory_space<vmem>>, %arg4: memref<1x4x1xf32, #tpu.memory_space<vmem>>, %arg5: memref<1x4x1xf32, #tpu.memory_space<vmem>>, %arg6: memref<2x4x256xf32, #tpu.memory_space<vmem>>) attributes {dimension_semantics = [#tpu.dimension_semantics<parallel>, #tpu.dimension_semantics<parallel>, #tpu.dimension_semantics<parallel>], iteration_bounds = array<i64: 1, 1, 1>, scalar_prefetch = 0 : i64, scratch_operands = 0 : i64, tpu.core_type = #tpu.core_type<tc>, window_params = [{transform_indices = @transform_0, window_bounds = array<i64: 2, 4, 256>}, {transform_indices = @transform_1, window_bounds = array<i64: 1, 4, 1>}, {transform_indices = @transform_2, window_bounds = array<i64: 1, 4, 1>}, {transform_indices = @transform_3, window_bounds = array<i64: 2, 4, 256>}]} {
    %c0 = arith.constant 0 : index
    %c0_0 = arith.constant 0 : index
    %c0_1 = arith.constant 0 : index
    %0 = vector.load %arg3[%c0, %c0_0, %c0_1] : memref<2x4x256xf32, #tpu.memory_space<vmem>>, vector<2x4x256xf32>
    %c0_2 = arith.constant 0 : index
    %c0_3 = arith.constant 0 : index
    %c0_4 = arith.constant 0 : index
    %1 = vector.load %arg4[%c0_2, %c0_3, %c0_4] : memref<1x4x1xf32, #tpu.memory_space<vmem>>, vector<1x4x1xf32>
    %2 = vector.broadcast %1 : vector<1x4x1xf32> to vector<2x4x256xf32>
    %3 = arith.mulf %0, %2 : vector<2x4x256xf32>
    %c0_5 = arith.constant 0 : index
    %c0_6 = arith.constant 0 : index
    %c0_7 = arith.constant 0 : index
    %4 = vector.load %arg5[%c0_5, %c0_6, %c0_7] : memref<1x4x1xf32, #tpu.memory_space<vmem>>, vector<1x4x1xf32>
    %5 = vector.broadcast %4 : vector<1x4x1xf32> to vector<2x4x256xf32>
    %6 = arith.addf %3, %5 : vector<2x4x256xf32>
    %c0_8 = arith.constant 0 : index
    %c0_9 = arith.constant 0 : index
    %c0_10 = arith.constant 0 : index
    %7 = vector.load %arg6[%c0_8, %c0_9, %c0_10] : memref<2x4x256xf32, #tpu.memory_space<vmem>>, vector<2x4x256xf32>
    tpu.vector_store %arg6[%c0_8, %c0_9, %c0_10], %6 {strides = array<i32>} : memref<2x4x256xf32, #tpu.memory_space<vmem>>, vector<2x4x256xf32>,
    return
  }
  func.func @transform_0(%arg0: i32, %arg1: i32, %arg2: i32) -> (i32, i32, i32) {
    %c0_i32 = arith.constant 0 : i32
    return %arg0, %arg1, %arg2 : i32, i32, i32
  }
  func.func @transform_1(%arg0: i32, %arg1: i32, %arg2: i32) -> (i32, i32, i32) {
    %c0_i32 = arith.constant 0 : i32
    %c0_i32_0 = arith.constant 0 : i32
    %c0_i32_1 = arith.constant 0 : i32
    return %c0_i32, %arg1, %c0_i32_0 : i32, i32, i32
  }
  func.func @transform_2(%arg0: i32, %arg1: i32, %arg2: i32) -> (i32, i32, i32) {
    %c0_i32 = arith.constant 0 : i32
    %c0_i32_0 = arith.constant 0 : i32
    %c0_i32_1 = arith.constant 0 : i32
    return %c0_i32, %arg1, %c0_i32_0 : i32, i32, i32
  }
  func.func @transform_3(%arg0: i32, %arg1: i32, %arg2: i32) -> (i32, i32, i32) {
    %c0_i32 = arith.constant 0 : i32
    return %arg0, %arg1, %arg2 : i32, i32, i32
  }
}

</mosaic_0001>

<bundles_post_ra>
// kernel: tpu_custom_call.1
= control target key start
LH: loop header
LB: loop body
LE: loop exit
PB: predicated region body
PF: predicated region fallthrough
CT: control target
= control target key end

     0   :  { %8 = vsyncpa [#allocation3], 0  ;;  %s175_s0 = inlined_call_operand.hbm [shape: f32[2,4,256], index: 0, kind: input, shape index: {}]   ;;  %s176_s1 = inlined_call_operand.vmem [shape: f32[1,4,1], index: 1, kind: input, shape index: {}]   ;;  %s177_s2 = inlined_call_operand.vmem [shape: f32[1,4,1], index: 2, kind: input, shape index: {}]   ;;  %s178_s3 = inlined_call_operand.hbm [shape: f32[2,4,256], index: 3, kind: output, shape index: {}]  }
   0x1   :  { %9 = vsyncpa [#allocation4], 0  ;;  %s131_s12 = smov [#allocation2]  }
   0x2   :  { %s15_s13 = sshll.u32 %s131_s12, 4  ;;  %s16_s13 = int_to_ptr.vmem [resolvable:$true] %s15_s13 }
   0x3   :  { %s95_s14 = scalar_lea.vmem %s16_s13, 256  ;;  %p100_p1 = scmp.lt.s32.totalorder %s16_s13, %s16_s13 }
   0x4   :  { %p96_p0 = scmp.ne.s32.totalorder %s16_s13, %s95_s14  ;;  %p101_p2 = scmp.lt.s32.totalorder %s95_s14, %s95_s14 }
   0x6   :  { %p102_p3 = por %p101_p2, %p100_p1 }
   0x8   :  { %p103_p4 = pnand %p102_p3, %p96_p0 }
   0xa   :  { %106 = shalt.err (!%p103_p4)
}
   0xb   :  { %s132_s15 = smov 128   ;;  %s133_s16 = smov 8  }
   0xc   :  { %21 = dma.hbm_to_vmem [thread:$0]  %s175_s0, 256, %s16_s13, [#allocation3], %s132_s15, %s132_s15, %s133_s16  }
   0xd   :  { %127 = dma.done.wait [#allocation3], 256  }
   0xe   :  { %128 = vsyncadd [#allocation3], 4294967040  ;;  %v134_v0 = vmov 0   ;;  %v31_v1 = vld [vmem:[%s176_s1] sm:$0xf]  ;;  %v39_v5 = vlaneseq  ;;  %v30_v12 = vld [vmem:[#allocation2 + $0x8] sm:$0xff] }
   0xf   :  { %86 = vset.pattern.permute.xlu0 %v134_v0  ;;  %v46_v2 = vld [vmem:[%s177_s2] sm:$0xf]  ;;  %v135_v3 = vmov 839922192   ;;  %s136_s0 = smov [#allocation5]  }
  0x10   :  { %34 = vperm.xlu0 %86, %v31_v1   ;;  %v37_v4 = vunpack.c.l.s4 %v135_v3  ;;  %v40_v7 = vshrl.u32 %v39_v5, 7  ;;  %v29_v11 = vld [vmem:[#allocation2] sm:$0xff]  ;;  %s68_s23 = sshll.u32 %s136_s0, 4  ;;  %s69_s23 = int_to_ptr.vmem [resolvable:$true] %s68_s23 }
  0x11   :  { %s107_s1 = scalar_lea.vmem %s69_s23, 256  ;;  %p112_p6 = scmp.lt.s32.totalorder %s69_s23, %s69_s23 }
  0x12   :  { %v38_v6 = vunpack.c.0.s8 %v37_v4  ;;  %p108_p5 = scmp.ne.s32.totalorder %s69_s23, %s107_s1  ;;  %p113_p7 = scmp.lt.s32.totalorder %s107_s1, %s107_s1 }
  0x14   :  { %49 = vperm.xlu0 %86, %v46_v2   ;;  %v41_v8 = vsub.s32 %v38_v6, %v40_v7  ;;  %p114_p8 = por %p113_p7, %p112_p6 }
  0x16   :  { %p115_p9 = pnand %p114_p8, %p108_p5 }
  0x8b   :  { %v35_v9 = vpop.permute.xlu0 %34 }
  0x8c   :  { %v42_v10 = vrot.slane %v35_v9, %v41_v8 }
  0x8e   :  { %v44_v14 = vmul.f32 %v42_v10, %v29_v11  ;;  %v45_v15 = vmul.f32 %v42_v10, %v30_v12 }
  0x8f   :  { %v50_v13 = vpop.permute.xlu0 %49 }
  0x90   :  { %v57_v16 = vrot.slane %v50_v13, %v41_v8 }
  0x92   :  { %v59_v17 = vadd.f32 %v57_v16, %v44_v14  ;;  %v60_v18 = vadd.f32 %v57_v16, %v45_v15 }
  0x94   :  { %61 = vst [vmem:[#allocation5] sm:$0xff] %v59_v17  ;;  %62 = vst [vmem:[#allocation5 + $0x8] sm:$0xff] %v60_v18 }
  0x95   :  { %118 = shalt.err (!%p115_p9)
}
  0x96   :  { %74 = dma.vmem_to_hbm [thread:$0]  %s69_s23, 256, %s178_s3, [#allocation4], %s132_s15, %s132_s15, %s133_s16  }
  0x97   :  { %129 = dma.done.wait [#allocation4], 256  }
  0x98   :  { %130 = vsyncadd [#allocation4], 4294967040 }
  0x99   :  { %78 = vsyncpa [#allocation3], 1 }
  0x9a   :  { %79 = vsyncpa [#allocation4], 1 }

</bundles_post_ra>
